<compile_context>
chip_gen: v5e
topology: v5e:2x2
jax: 0.10.0
libtpu: 0.0.40
codegen_flags: <defaults>
</compile_context>

<pallas_src>
import functools

import jax
import jax.numpy as jnp
import numpy as np
from jax import lax
from jax.experimental import pallas as pl
from jax.experimental.pallas import tpu as pltpu


def _round_up(x: int, m: int) -> int:
    return -(-x // m) * m


def _effective_t_tile(T: int, C: int, itemsize: int, t_tile: int) -> int:
    """Time tile actually used: a multiple of 128, capped so double-buffered
    input + output blocks stay well inside the smallest scoped-VMEM default
    (v5e 16 MiB; v6e/v7x scoped defaults are >= 32 MiB, so no per-gen branch)."""
    vmem_budget = 12 * 1024 * 1024
    cap = vmem_budget // (2 * (C * itemsize + 4))
    cap = max(128, (cap // 128) * 128)
    t = min(max(int(t_tile), 128), cap, _round_up(T, 128))
    return max(128, (t // 128) * 128)


def _make_ctc_kernel(blank: int, t_total: int):
    def ctc_kernel(em_ref, out_ref):
        x = em_ref[...]                                    # (Tt, C), natural layout
        Tt, C = x.shape

        # ---- per-frame argmax over classes (lane reduces, natural layout) ----
        # first-maximal-index tie break; NaN counts as maximal (torch.argmax).
        colf = lax.broadcasted_iota(jnp.int32, (Tt, C), 1).astype(jnp.float32)
        m = jnp.max(x, axis=1, keepdims=True)              # (Tt, 1)
        is_cand = (x == m) | (x != x)                      # (x != x) == isnan(x)
        first = jnp.min(jnp.where(is_cand, colf, jnp.float32(C)),
                        axis=1, keepdims=True)             # (Tt, 1)
        onehot = (colf == first).astype(jnp.float32)       # exactly one 1.0 per row

        # ---- relayout time -> lanes via a tiny MXU matmul --------------------
        # idx[t] = sum_c c * onehot[t, c]; exact (one-hot x small integers) in
        # any matmul precision, and the MXU is otherwise idle here.
        cvals = lax.broadcasted_iota(jnp.int32, (8, C), 1).astype(jnp.float32)
        idx_f = lax.dot_general(cvals, onehot, (((1,), (1,)), ((), ())),
                                preferred_element_type=jnp.float32)   # (8, Tt)
        idx = (idx_f[0:1, :] + 0.5).astype(jnp.int32)      # (1, Tt), lane-dense

        # ---- unique_consecutive + blank removal -> keep mask -----------------
        pos = lax.broadcasted_iota(jnp.int32, (1, Tt), 1)
        prev = pltpu.roll(idx, shift=1, axis=1)            # idx[t-1] within the tile
        # Each tile's first frame is treated as "changed"; the <= n_tiles
        # tile-boundary frames are fixed up host-side (keeps the grid parallel).
        prev = jnp.where(pos == 0, jnp.int32(-1), prev)
        keep = (idx != prev) & (idx != jnp.int32(blank))
        keep = keep & ((pl.program_id(0) * Tt + pos) < t_total)   # mask ragged tail

        # ---- pack: low 16 bits = argmax index, bit 16 = keep flag -------------
        out_ref[...] = idx + keep.astype(jnp.int32) * (1 << 16)

    return ctc_kernel


@functools.partial(jax.jit, static_argnames=("blank", "t_tile"))
def greedy_ctc_packed(emission: jax.Array, blank: int = 0, t_tile: int = 8192) -> jax.Array:
    """Packed (1, Tp) int32: bits [0,16) = per-frame argmax, bit 16 = keep flag."""
    T, C = emission.shape
    itemsize = emission.dtype.itemsize
    eff = _effective_t_tile(T, C, itemsize, t_tile)
    n_tiles = -(-T // eff)
    Tp = n_tiles * eff

    em = emission
    if n_tiles == 1 and Tp != T:
        # Single-tile, non-128-multiple input: cheap zero-pad (array is < one
        # tile; padded rows are masked in-kernel and never consumed).  Multi-tile
        # ragged tails use the natural partial last block — no whole-array copy.
        em = jnp.pad(em, ((0, Tp - T), (0, 0)))

    return pl.pallas_call(
        _make_ctc_kernel(blank, T),
        out_shape=jax.ShapeDtypeStruct((1, Tp), jnp.int32),
        grid_spec=pltpu.PrefetchScalarGridSpec(
            num_scalar_prefetch=0,
            grid=(n_tiles,),
            in_specs=[pl.BlockSpec((eff, C), lambda i: (i, 0))],
            out_specs=pl.BlockSpec((1, eff), lambda i: (0, i)),
        ),
        compiler_params=pltpu.CompilerParams(
            # no cross-tile state -> grid can be sharded across TensorCores (v7x)
            dimension_semantics=("parallel",),
        ),
        cost_estimate=pl.CostEstimate(
            flops=6 * T * C + 2 * 8 * C * Tp,
            transcendentals=0,
            bytes_accessed=T * C * itemsize + Tp * 4,
        ),
    )(em)


class GreedyCTCDecoder:
    def __init__(self, labels, blank: int = 0, t_tile: int = 8192):
        self.labels = labels
        self.blank = blank
        self.t_tile = t_tile
        self._labels_arr = np.asarray(list(labels), dtype=object)

    def __call__(self, emission: jax.Array) -> str:
        T, C = emission.shape
        eff = _effective_t_tile(T, C, emission.dtype.itemsize, self.t_tile)

        packed = jax.block_until_ready(
            greedy_ctc_packed(emission, blank=self.blank, t_tile=self.t_tile))
        row = np.asarray(jax.device_get(packed))[0, :T]    # single small host transfer

        idx = row & 0xFFFF
        keep = (row >> 16).astype(bool)
        # fix up tile-boundary frames (kernel marks each tile's first frame "changed")
        b = np.arange(eff, T, eff)
        if b.size:
            keep[b] &= idx[b] != idx[b - 1]

        # TODO(synk): data-dependent compaction + Python string join has no clean
        # Pallas equivalent; done host-side with vectorized numpy from the kernel output.
        return ''.join(self._labels_arr[idx[keep]].tolist())


def _reference_decode(em_np: np.ndarray, labels, blank: int) -> str:
    ref_idx = em_np.argmax(axis=-1)
    out, prev = [], None
    for i in ref_idx:
        if i != prev and i != blank:
            out.append(labels[int(i)])
        prev = i
    return ''.join(out)


if __name__ == "__main__":
    labels = ['-'] + list("abcdefghijklmnopqrstuvwxyz") + list(" '.,?")
    C = len(labels)                                        # 32 classes
    key = jax.random.PRNGKey(0)
    k1, k2 = jax.random.split(key)

    # test 1: tiny single-tile emission (T=8, C=32) — exercises the padded
    # single-block path and the ragged-tail mask.
    emission = jax.random.normal(k1, (8, C), dtype=jnp.float32)
    decoder = GreedyCTCDecoder(labels, blank=0)
    transcript = decoder(emission)
    ref = _reference_decode(np.asarray(emission), labels, 0)
    assert transcript == ref, (transcript, ref)

    # test 2: multi-tile ragged emission with repeated consecutive frames that
    # straddle tile boundaries — exercises the partial last block, the in-kernel
    # tail mask, unique_consecutive, and the host-side tile-boundary fixup.
    base = jax.random.normal(k2, (150, C), dtype=jnp.float32)
    emission2 = jnp.repeat(base, 2, axis=0)[1:]            # (299, C) -> 3 tiles of 128
    decoder2 = GreedyCTCDecoder(labels, blank=0, t_tile=128)
    transcript2 = decoder2(emission2)
    ref2 = _reference_decode(np.asarray(emission2), labels, 0)
    assert transcript2 == ref2, (transcript2, ref2)

    print("KERNEL_OK")
</pallas_src>

<mosaic_0001>
module attributes {stable_mosaic.version = 11 : i64} {
  func.func @ctc_kernel(%arg0: i32, %arg1: memref<128x32xf32, #tpu.memory_space<vmem>>, %arg2: memref<1x128xi32, #tpu.memory_space<vmem>>) attributes {dimension_semantics = [#tpu.dimension_semantics<parallel>], iteration_bounds = array<i64: 1>, scalar_prefetch = 0 : i64, scratch_operands = 0 : i64, tpu.core_type = #tpu.core_type<tc>, window_params = [{transform_indices = @transform_0, window_bounds = array<i64: 128, 32>}, {transform_indices = @transform_1, window_bounds = array<i64: 1, 128>}]} {
    %c0 = arith.constant 0 : index
    %c0_0 = arith.constant 0 : index
    %0 = vector.load %arg1[%c0, %c0_0] : memref<128x32xf32, #tpu.memory_space<vmem>>, vector<128x32xf32>
    %1 = tpu.iota {dimensions = array<i32: 1>} : vector<128x32xi32>
    %2 = arith.sitofp %1 : vector<128x32xi32> to vector<128x32xf32>
    %cst = arith.constant dense<0xFF800000> : vector<128xf32>
    %3 = vector.multi_reduction <maximumf>, %0, %cst [1] : vector<128x32xf32> to vector<128xf32>
    %4 = vector.shape_cast %3 : vector<128xf32> to vector<128x1xf32>
    %5 = vector.broadcast %4 : vector<128x1xf32> to vector<128x32xf32>
    %6 = arith.cmpf oeq, %0, %5 : vector<128x32xf32>
    %7 = arith.cmpf one, %0, %0 : vector<128x32xf32>
    %8 = arith.ori %6, %7 : vector<128x32xi1>
    %cst_1 = arith.constant 3.200000e+01 : f32
    %9 = vector.broadcast %cst_1 : f32 to vector<128x32xf32>
    %10 = arith.select %8, %2, %9 : vector<128x32xi1>, vector<128x32xf32>
    %cst_2 = arith.constant dense<0x7F800000> : vector<128xf32>
    %11 = vector.multi_reduction <minimumf>, %10, %cst_2 [1] : vector<128x32xf32> to vector<128xf32>
    %12 = vector.shape_cast %11 : vector<128xf32> to vector<128x1xf32>
    %13 = vector.broadcast %12 : vector<128x1xf32> to vector<128x32xf32>
    %14 = arith.cmpf oeq, %2, %13 : vector<128x32xf32>
    %15 = arith.extui %14 : vector<128x32xi1> to vector<128x32xi32>
    %16 = arith.sitofp %15 : vector<128x32xi32> to vector<128x32xf32>
    %17 = tpu.iota {dimensions = array<i32: 1>} : vector<8x32xi32>
    %18 = arith.sitofp %17 : vector<8x32xi32> to vector<8x32xf32>
    %cst_3 = arith.constant dense<0.000000e+00> : vector<8x128xf32>
    %19 = tpu.matmul %18, %16, %cst_3 {dimension_numbers = #tpu.dot_dimension_numbers<[1], [1], [0], [0], [0, 0, 1, 0], [], []>} : vector<8x32xf32>, vector<128x32xf32>, vector<8x128xf32> -> vector<8x128xf32>
    %20 = vector.extract_strided_slice %19 {offsets = [0, 0], sizes = [1, 128], strides = [1, 1]} : vector<8x128xf32> to vector<1x128xf32>
    %cst_4 = arith.constant 5.000000e-01 : f32
    %21 = vector.broadcast %cst_4 : f32 to vector<1x128xf32>
    %22 = arith.addf %20, %21 : vector<1x128xf32>
    %23 = arith.fptosi %22 : vector<1x128xf32> to vector<1x128xi32>
    %24 = tpu.iota {dimensions = array<i32: 1>} : vector<1x128xi32>
    %c1_i32 = arith.constant 1 : i32
    %25 = tpu.dynamic_rotate %23 by %c1_i32 dim 1 : vector<1x128xi32>, i32 -> vector<1x128xi32>
    %c0_i32 = arith.constant 0 : i32
    %26 = vector.broadcast %c0_i32 : i32 to vector<1x128xi32>
    %27 = arith.cmpi eq, %24, %26 : vector<1x128xi32>
    %c-1_i32 = arith.constant -1 : i32
    %28 = vector.broadcast %c-1_i32 : i32 to vector<1x128xi32>
    %29 = arith.select %27, %28, %25 : vector<1x128xi1>, vector<1x128xi32>
    %30 = arith.cmpi ne, %23, %29 : vector<1x128xi32>
    %c0_i32_5 = arith.constant 0 : i32
    %31 = vector.broadcast %c0_i32_5 : i32 to vector<1x128xi32>
    %32 = arith.cmpi ne, %23, %31 : vector<1x128xi32>
    %33 = arith.andi %30, %32 : vector<1x128xi1>
    %c128_i32 = arith.constant 128 : i32
    %34 = arith.muli %arg0, %c128_i32 : i32
    %35 = vector.broadcast %34 : i32 to vector<1x128xi32>
    %36 = arith.addi %35, %24 : vector<1x128xi32>
    %c8_i32 = arith.constant 8 : i32
    %37 = vector.broadcast %c8_i32 : i32 to vector<1x128xi32>
    %38 = arith.cmpi slt, %36, %37 : vector<1x128xi32>
    %39 = arith.andi %33, %38 : vector<1x128xi1>
    %40 = arith.extui %39 : vector<1x128xi1> to vector<1x128xi32>
    %c65536_i32 = arith.constant 65536 : i32
    %41 = vector.broadcast %c65536_i32 : i32 to vector<1x128xi32>
    %42 = arith.muli %40, %41 : vector<1x128xi32>
    %43 = arith.addi %23, %42 : vector<1x128xi32>
    %c0_6 = arith.constant 0 : index
    %c0_7 = arith.constant 0 : index
    %44 = vector.load %arg2[%c0_6, %c0_7] : memref<1x128xi32, #tpu.memory_space<vmem>>, vector<1x128xi32>
    tpu.vector_store %arg2[%c0_6, %c0_7], %43 {strides = array<i32>} : memref<1x128xi32, #tpu.memory_space<vmem>>, vector<1x128xi32>,
    return
  }
  func.func @transform_0(%arg0: i32) -> (i32, i32) {
    %c0_i32 = arith.constant 0 : i32
    %c0_i32_0 = arith.constant 0 : i32
    return %arg0, %c0_i32 : i32, i32
  }
  func.func @transform_1(%arg0: i32) -> (i32, i32) {
    %c0_i32 = arith.constant 0 : i32
    %c0_i32_0 = arith.constant 0 : i32
    return %c0_i32, %arg0 : i32, i32
  }
}

</mosaic_0001>

<bundles_post_ra>
// kernel: greedy_ctc_packed.1
= control target key start
LH: loop header
LB: loop body
LE: loop exit
PB: predicated region body
PF: predicated region fallthrough
CT: control target
= control target key end

     0   :  { %vm28_vm0 = vcmask 261120   ;;  %s664_s0 = inlined_call_operand.vmem [shape: f32[128,32], index: 0, kind: input, shape index: {}]   ;;  %s665_s1 = inlined_call_operand.hbm [shape: s32[1,128], index: 1, kind: output, shape index: {}]  }
   0x1   :  { %v24_v0 = vld [vmem:[%s664_s0 + $0x78] sm:$0xff]  ;;  %v22_v1 = vld [vmem:[%s664_s0 + $0x68] sm:$0xff] }
   0x2   :  { %v74_v2 = vsel %vm28_vm0, %v24_v0, -inf  ;;  %v68_v3 = vsel %vm28_vm0, %v22_v1, -inf  ;;  %v435_v4 = vld [vmem:[%s664_s0 + $0x58] sm:$0xff] }
   0x3   :  { %75 = vmax.xlane.f32.xlu0 %v74_v2  ;;  %69 = vmax.xlane.f32.xlu1 %v68_v3  ;;  %v62_v5 = vsel %vm28_vm0, %v435_v4, -inf }
   0x4   :  { %63 = vmax.xlane.f32.xlu2 %v62_v5 }
   0x5   :  { %6 = vsyncpa [#allocation3], 0  ;;  %v23_v6 = vld [vmem:[%s664_s0 + $0x70] sm:$0xff]  ;;  %v21_v7 = vld [vmem:[%s664_s0 + $0x60] sm:$0xff]  ;;  %v25_v26 = vlaneseq  ;;  %vm108_vm1 = vcmp.ne.f32.partialorder %v24_v0, %v24_v0  ;;  %vm106_vm2 = vcmp.ne.f32.partialorder %v22_v1, %v22_v1  ;;  %vm104_vm14 = vcmp.ne.f32.partialorder %v435_v4, %v435_v4  ;;  %s413_s9 = smov [#allocation2]   ;;  %s333_s13 = sshll.u32 %s665_s1, 4  ;;  %s334_s13 = int_to_ptr.hbm [resolvable:$true] %s333_s13 }
   0x6   :  { %v448_v8 = vld [vmem:[%s664_s0 + $0x50] sm:$0xff]  ;;  %v71_v9 = vsel %vm28_vm0, %v23_v6, -inf  ;;  %v65_v10 = vsel %vm28_vm0, %v21_v7, -inf  ;;  %v457_v12 = vld [vmem:[%s664_s0 + $0x48] sm:$0xff]  ;;  %v462_v13 = vld [vmem:[%s664_s0 + $0x40] sm:$0xff]  ;;  %vm107_vm7 = vcmp.ne.f32.partialorder %v23_v6, %v23_v6  ;;  %vm105_vm9 = vcmp.ne.f32.partialorder %v21_v7, %v21_v7  ;;  %s331_s10 = sshll.u32 %s413_s9, 4  ;;  %s332_s10 = int_to_ptr.vmem [resolvable:$true] %s331_s10 }
   0x7   :  { %v59_v11 = vsel %vm28_vm0, %v448_v8, -inf  ;;  %v467_v14 = vld [vmem:[%s664_s0 + $0x38] sm:$0xff]  ;;  %v56_v15 = vsel %vm28_vm0, %v457_v12, -inf  ;;  %v53_v16 = vsel %vm28_vm0, %v462_v13, -inf  ;;  %v478_v18 = vld [vmem:[%s664_s0 + $0x30] sm:$0xff]  ;;  %v485_v20 = vld [vmem:[%s664_s0 + $0x28] sm:$0xff]  ;;  %vm102_vm13 = vcmp.ne.f32.partialorder %v457_v12, %v457_v12 }
   0x8   :  { %v50_v17 = vsel %vm28_vm0, %v467_v14, -inf  ;;  %v47_v19 = vsel %vm28_vm0, %v478_v18, -inf  ;;  %v44_v21 = vsel %vm28_vm0, %v485_v20, -inf  ;;  %v492_v22 = vld [vmem:[%s664_s0 + $0x20] sm:$0xff]  ;;  %v499_v24 = vld [vmem:[%s664_s0 + $0x18] sm:$0xff]  ;;  %v503_v27 = vand.u32 127, %v25_v26 }
   0x9   :  { %v41_v23 = vsel %vm28_vm0, %v492_v22, -inf  ;;  %v38_v25 = vsel %vm28_vm0, %v499_v24, -inf  ;;  %v515_v36 = vld [vmem:[%s664_s0 + $0x10] sm:$0xff]  ;;  %v520_v38 = vld [vmem:[%s664_s0] sm:$0xff]  ;;  %v535_v46 = vld [vmem:[%s664_s0 + $0x8] sm:$0xff]  ;;  %s411_s0 = smov 1  }
   0xa   :  { %v506_v28 = vcvt.s32.f32 %v503_v27  ;;  %v35_v40 = vsel %vm28_vm0, %v515_v36, -inf  ;;  %v29_v42 = vsel %vm28_vm0, %v520_v38, -inf  ;;  %v32_v49 = vsel %vm28_vm0, %v535_v46, -inf }
   0xb   :  { %72 = vmax.xlane.f32.xlu0 %v71_v9  ;;  %66 = vmax.xlane.f32.xlu1 %v65_v10 }
   0xc   :  { %60 = vmax.xlane.f32.xlu2 %v59_v11 }
  0x13   :  { %57 = vmax.xlane.f32.xlu0 %v56_v15  ;;  %54 = vmax.xlane.f32.xlu1 %v53_v16 }
  0x14   :  { %51 = vmax.xlane.f32.xlu2 %v50_v17 }
  0x1b   :  { %48 = vmax.xlane.f32.xlu0 %v47_v19  ;;  %45 = vmax.xlane.f32.xlu1 %v44_v21 }
  0x1c   :  { %42 = vmax.xlane.f32.xlu2 %v41_v23 }
  0x23   :  { %39 = vmax.xlane.f32.xlu1 %v38_v25 }
  0x76   :  { %v76_v29 = vpop.xlane.xlu0 %75  ;;  %v70_v30 = vpop.xlane.xlu1 %69 }
  0x77   :  { %vm92_vm3 = vcmp.eq.f32.partialorder %v24_v0, %v76_v29  ;;  %vm90_vm4 = vcmp.eq.f32.partialorder %v22_v1, %v70_v30  ;;  %v64_v34 = vpop.xlane.xlu2 %63 }
  0x78   :  { %vm124_vm5 = vmor %vm92_vm3, %vm108_vm1  ;;  %vm88_vm15 = vcmp.eq.f32.partialorder %v435_v4, %v64_v34  ;;  %vm103_vm1 = vcmp.ne.f32.partialorder %v448_v8, %v448_v8 }
  0x79   :  { %v140_v31 = vsel %vm124_vm5, %v506_v28, 32.0  ;;  %vm122_vm6 = vmor %vm90_vm4, %vm106_vm2 }
  0x7a   :  { %v186_v32 = vsel %vm28_vm0, %v140_v31, inf  ;;  %v138_v33 = vsel %vm122_vm6, %v506_v28, 32.0  ;;  %vm552_vm5 = vmor %vm88_vm15, %vm104_vm14 }
  0x7b   :  { %187 = vmin.xlane.f32.xlu0 %v186_v32  ;;  %v180_v35 = vsel %vm28_vm0, %v138_v33, inf  ;;  %v136_v56 = vsel %vm552_vm5, %v506_v28, 32.0 }
  0x7c   :  { %181 = vmin.xlane.f32.xlu1 %v180_v35  ;;  %v174_v58 = vsel %vm28_vm0, %v136_v56, inf }
  0x7e   :  { %v73_v37 = vpop.xlane.xlu0 %72  ;;  %v67_v39 = vpop.xlane.xlu1 %66 }
  0x7f   :  { %vm91_vm8 = vcmp.eq.f32.partialorder %v23_v6, %v73_v37  ;;  %vm89_vm10 = vcmp.eq.f32.partialorder %v21_v7, %v67_v39  ;;  %v61_v45 = vpop.xlane.xlu2 %60 }
  0x80   :  { %vm123_vm11 = vmor %vm91_vm8, %vm107_vm7  ;;  %vm87_vm2 = vcmp.eq.f32.partialorder %v448_v8, %v61_v45  ;;  %vm101_vm7 = vcmp.ne.f32.partialorder %v462_v13, %v462_v13 }
  0x81   :  { %v139_v41 = vsel %vm123_vm11, %v506_v28, 32.0  ;;  %vm528_vm12 = vmor %vm89_vm10, %vm105_vm9  ;;  %vm100_vm9 = vcmp.ne.f32.partialorder %v467_v14, %v467_v14 }
  0x82   :  { %v183_v43 = vsel %vm28_vm0, %v139_v41, inf  ;;  %v137_v47 = vsel %vm528_vm12, %v506_v28, 32.0  ;;  %vm119_vm6 = vmor %vm87_vm2, %vm103_vm1  ;;  %vm98_vm1 = vcmp.ne.f32.partialorder %v485_v20, %v485_v20 }
  0x83   :  { %184 = vmin.xlane.f32.xlu2 %v183_v43  ;;  %36 = vmax.xlane.f32.xlu0 %v35_v40  ;;  %v177_v50 = vsel %vm28_vm0, %v137_v47, inf  ;;  %v135_v57 = vsel %vm119_vm6, %v506_v28, 32.0 }
  0x84   :  { %30 = vmax.xlane.f32.xlu1 %v29_v42  ;;  %v171_v59 = vsel %vm28_vm0, %v135_v57, inf }
  0x86   :  { %v58_v48 = vpop.xlane.xlu0 %57  ;;  %v55_v54 = vpop.xlane.xlu1 %54 }
  0x87   :  { %vm86_vm3 = vcmp.eq.f32.partialorder %v457_v12, %v58_v48  ;;  %v52_v55 = vpop.xlane.xlu2 %51  ;;  %vm85_vm8 = vcmp.eq.f32.partialorder %v462_v13, %v55_v54 }
  0x88   :  { %vm118_vm4 = vmor %vm86_vm3, %vm102_vm13  ;;  %vm84_vm10 = vcmp.eq.f32.partialorder %v467_v14, %v52_v55  ;;  %vm99_vm13 = vcmp.ne.f32.partialorder %v478_v18, %v478_v18  ;;  %v410_v14 = vmov 0.0  }
  0x89   :  { %v134_v52 = vsel %vm118_vm4, %v506_v28, 32.0  ;;  %vm117_vm11 = vmor %vm85_vm8, %vm101_vm7  ;;  %vm97_vm4 = vcmp.ne.f32.partialorder %v492_v22, %v492_v22  ;;  %vm96_vm7 = vcmp.ne.f32.partialorder %v499_v24, %v499_v24 }
  0x8a   :  { %v168_v53 = vsel %vm28_vm0, %v134_v52, inf  ;;  %vm116_vm12 = vmor %vm84_vm10, %vm100_vm9  ;;  %v133_v60 = vsel %vm117_vm11, %v506_v28, 32.0  ;;  %vm95_vm11 = vcmp.ne.f32.partialorder %v515_v36, %v515_v36 }
  0x8b   :  { %33 = vmax.xlane.f32.xlu2 %v32_v49  ;;  %178 = vmin.xlane.f32.xlu0 %v177_v50  ;;  %v132_v61 = vsel %vm116_vm12, %v506_v28, 32.0  ;;  %v165_v62 = vsel %vm28_vm0, %v133_v60, inf  ;;  %vm93_vm12 = vcmp.ne.f32.partialorder %v520_v38, %v520_v38 }
  0x8c   :  { %169 = vmin.xlane.f32.xlu1 %v168_v53  ;;  %v162_v63 = vsel %vm28_vm0, %v132_v61, inf }
  0x8e   :  { %v49_v0 = vpop.xlane.xlu0 %48  ;;  %v46_v3 = vpop.xlane.xlu1 %45 }
  0x8f   :  { %vm83_vm14 = vcmp.eq.f32.partialorder %v478_v18, %v49_v0  ;;  %vm82_vm2 = vcmp.eq.f32.partialorder %v485_v20, %v46_v3  ;;  %v43_v5 = vpop.xlane.xlu2 %42 }
  0x90   :  { %vm115_vm15 = vmor %vm83_vm14, %vm99_vm13  ;;  %vm81_vm5 = vcmp.eq.f32.partialorder %v492_v22, %v43_v5 }
  0x91   :  { %v131_v1 = vsel %vm115_vm15, %v506_v28, 32.0  ;;  %vm114_vm3 = vmor %vm82_vm2, %vm98_vm1 }
  0x92   :  { %v159_v2 = vsel %vm28_vm0, %v131_v1, inf  ;;  %v130_v4 = vsel %vm114_vm3, %v506_v28, 32.0  ;;  %vm113_vm6 = vmor %vm81_vm5, %vm97_vm4  ;;  %vm94_vm4 = vcmp.ne.f32.partialorder %v535_v46, %v535_v46 }
  0x93   :  { %175 = vmin.xlane.f32.xlu2 %v174_v58  ;;  %172 = vmin.xlane.f32.xlu0 %v171_v59  ;;  %v156_v6 = vsel %vm28_vm0, %v130_v4, inf  ;;  %v129_v7 = vsel %vm113_vm6, %v506_v28, 32.0 }
  0x94   :  { %160 = vmin.xlane.f32.xlu1 %v159_v2  ;;  %v153_v9 = vsel %vm28_vm0, %v129_v7, inf }
  0x96   :  { %v40_v8 = vpop.xlane.xlu1 %39 }
  0x97   :  { %vm80_vm8 = vcmp.eq.f32.partialorder %v499_v24, %v40_v8 }
  0x98   :  { %vm112_vm9 = vmor %vm80_vm8, %vm96_vm7 }
  0x99   :  { %v128_v10 = vsel %vm112_vm9, %v506_v28, 32.0 }
  0x9a   :  { %v150_v11 = vsel %vm28_vm0, %v128_v10, inf }
  0x9b   :  { %166 = vmin.xlane.f32.xlu2 %v165_v62  ;;  %163 = vmin.xlane.f32.xlu0 %v162_v63 }
  0x9c   :  { %151 = vmin.xlane.f32.xlu1 %v150_v11 }
  0xa3   :  { %157 = vmin.xlane.f32.xlu2 %v156_v6  ;;  %154 = vmin.xlane.f32.xlu0 %v153_v9 }
  0xee   :  { %v188_v12 = vpop.xlane.xlu0 %187 }
  0xef   :  { %vm204_vm10 = vcmp.eq.f32.partialorder %v506_v28, %v188_v12  ;;  %v182_v13 = vpop.xlane.xlu1 %181 }
  0xf0   :  { %v357_v15 = vsel %vm204_vm10, 1.0, %v410_v14  ;;  %vm202_vm14 = vcmp.eq.f32.partialorder %v506_v28, %v182_v13 }
  0xf1   :  { %358 = vmatpush.xpose.msk.msra.mxu0 %vm28_vm0, %v357_v15  ;;  %v355_v21 = vsel %vm202_vm14, 1.0, %v410_v14 }
  0xf6   :  { %v185_v16 = vpop.xlane.xlu2 %184  ;;  %v37_v17 = vpop.xlane.xlu0 %36 }
  0xf7   :  { %vm203_vm13 = vcmp.eq.f32.partialorder %v506_v28, %v185_v16  ;;  %vm79_vm15 = vcmp.eq.f32.partialorder %v515_v36, %v37_v17  ;;  %v31_v18 = vpop.xlane.xlu1 %30 }
  0xf8   :  { %v356_v19 = vsel %vm203_vm13, 1.0, %v410_v14  ;;  %vm111_vm1 = vmor %vm79_vm15, %vm95_vm11  ;;  %vm77_vm2 = vcmp.eq.f32.partialorder %v520_v38, %v31_v18 }
  0xf9   :  { %359 = vmatpush.xpose.msk.msra.mxu0 %vm28_vm0, %v356_v19  ;;  %v127_v20 = vsel %vm111_vm1, %v506_v28, 32.0  ;;  %vm109_vm3 = vmor %vm77_vm2, %vm93_vm12 }
  0xfa   :  { %v147_v22 = vsel %vm28_vm0, %v127_v20, inf  ;;  %v125_v23 = vsel %vm109_vm3, %v506_v28, 32.0 }
  0xfb   :  { %148 = vmin.xlane.f32.xlu2 %v147_v22  ;;  %v141_v24 = vsel %vm28_vm0, %v125_v23, inf }
  0xfc   :  { %142 = vmin.xlane.f32.xlu1 %v141_v24 }
  0xfd   :  { %360 = vmatpush.xpose.msk.msra.mxu0 %vm28_vm0, %v355_v21 }
  0xfe   :  { %v34_v25 = vpop.xlane.xlu2 %33  ;;  %v179_v26 = vpop.xlane.xlu0 %178 }
  0xff   :  { %vm78_vm5 = vcmp.eq.f32.partialorder %v535_v46, %v34_v25  ;;  %vm201_vm6 = vcmp.eq.f32.partialorder %v506_v28, %v179_v26  ;;  %v170_v35 = vpop.xlane.xlu1 %169 }
 0x100   :  { %vm110_vm7 = vmor %vm78_vm5, %vm94_vm4  ;;  %v354_v29 = vsel %vm201_vm6, 1.0, %v410_v14  ;;  %vm198_vm10 = vcmp.eq.f32.partialorder %v506_v28, %v170_v35  ;;  %vm312_vm6 = vcmp.eq.s32.totalorder %v503_v27, 0 }
 0x101   :  { %v126_v30 = vsel %vm110_vm7, %v506_v28, 32.0  ;;  %361 = vmatpush.xpose.msk.msra.mxu0 %vm28_vm0, %v354_v29  ;;  %v351_v37 = vsel %vm198_vm10, 1.0, %v410_v14  ;;  %vm320_vm7 = vcmp.lt.s32.totalorder %v503_v27, 8 }
 0x102   :  { %v144_v31 = vsel %vm28_vm0, %v126_v30, inf }
 0x103   :  { %145 = vmin.xlane.f32.xlu0 %v144_v31 }
 0x106   :  { %v176_v32 = vpop.xlane.xlu2 %175  ;;  %v173_v33 = vpop.xlane.xlu0 %172 }
 0x107   :  { %vm200_vm8 = vcmp.eq.f32.partialorder %v506_v28, %v176_v32  ;;  %vm199_vm9 = vcmp.eq.f32.partialorder %v506_v28, %v173_v33  ;;  %v161_v42 = vpop.xlane.xlu1 %160 }
 0x108   :  { %v353_v34 = vsel %vm200_vm8, 1.0, %v410_v14  ;;  %v352_v36 = vsel %vm199_vm9, 1.0, %v410_v14  ;;  %vm195_vm13 = vcmp.eq.f32.partialorder %v506_v28, %v161_v42 }
 0x109   :  { %362 = vmatpush.xpose.msk.msra.mxu0 %vm28_vm0, %v353_v34  ;;  %v348_v43 = vsel %vm195_vm13, 1.0, %v410_v14 }
 0x10d   :  { %363 = vmatpush.xpose.msk.msra.mxu0 %vm28_vm0, %v352_v36 }
 0x10e   :  { %v167_v38 = vpop.xlane.xlu2 %166  ;;  %v164_v39 = vpop.xlane.xlu0 %163 }
 0x10f   :  { %vm197_vm11 = vcmp.eq.f32.partialorder %v506_v28, %v167_v38  ;;  %vm196_vm12 = vcmp.eq.f32.partialorder %v506_v28, %v164_v39  ;;  %v152_v48 = vpop.xlane.xlu1 %151 }
 0x110   :  { %v350_v40 = vsel %vm197_vm11, 1.0, %v410_v14  ;;  %v349_v41 = vsel %vm196_vm12, 1.0, %v410_v14  ;;  %vm192_vm1 = vcmp.eq.f32.partialorder %v506_v28, %v152_v48 }
 0x111   :  { %364 = vmatpush.xpose.msk.msra.mxu0 %vm28_vm0, %v351_v37  ;;  %v345_v49 = vsel %vm192_vm1, 1.0, %v410_v14 }
 0x115   :  { %365 = vmatpush.xpose.msk.msra.mxu0 %vm28_vm0, %v350_v40 }
 0x116   :  { %v158_v44 = vpop.xlane.xlu2 %157  ;;  %v155_v46 = vpop.xlane.xlu0 %154 }
 0x117   :  { %vm194_vm14 = vcmp.eq.f32.partialorder %v506_v28, %v158_v44  ;;  %vm193_vm15 = vcmp.eq.f32.partialorder %v506_v28, %v155_v46 }
 0x118   :  { %v347_v45 = vsel %vm194_vm14, 1.0, %v410_v14  ;;  %v346_v47 = vsel %vm193_vm15, 1.0, %v410_v14 }
 0x119   :  { %366 = vmatpush.xpose.msk.msra.mxu0 %vm28_vm0, %v349_v41 }
 0x11d   :  { %367 = vmatpush.xpose.msk.msra.mxu0 %vm28_vm0, %v348_v43 }
 0x121   :  { %368 = vmatpush.xpose.msk.msra.mxu0 %vm28_vm0, %v347_v45 }
 0x125   :  { %369 = vmatpush.xpose.msk.msra.mxu0 %vm28_vm0, %v346_v47 }
 0x129   :  { %370 = vmatpush.xpose.msk.msra.mxu0 %vm28_vm0, %v345_v49 }
 0x16e   :  { %v149_v50 = vpop.xlane.xlu2 %148 }
 0x16f   :  { %vm191_vm2 = vcmp.eq.f32.partialorder %v506_v28, %v149_v50  ;;  %v143_v52 = vpop.xlane.xlu1 %142 }
 0x170   :  { %v344_v51 = vsel %vm191_vm2, 1.0, %v410_v14  ;;  %vm189_vm4 = vcmp.eq.f32.partialorder %v506_v28, %v143_v52 }
 0x171   :  { %371 = vmatpush.xpose.msk.msra.mxu0 %vm28_vm0, %v344_v51  ;;  %v342_v55 = vsel %vm189_vm4, 1.0, %v410_v14 }
 0x176   :  { %v146_v53 = vpop.xlane.xlu0 %145 }
 0x177   :  { %vm190_vm3 = vcmp.eq.f32.partialorder %v506_v28, %v146_v53 }
 0x178   :  { %v343_v54 = vsel %vm190_vm3, 1.0, %v410_v14 }
 0x179   :  { %372 = vmatpush.xpose.msk.msra.mxu0 %vm28_vm0, %v343_v54 }
 0x17d   :  { %373 = vmatpush.xpose.msk.msra.mxu0 %vm28_vm0, %v342_v55 }
 0x180   :  { %374 = vmatmul.msk.f32.vlgmr.msra.gmra.mxu0 %vm28_vm0, %v506_v28  ;;  %v412_v28 = vmov 0  }
 0x1fd   :  { %v305_v56 = vpop.f32.mrf.mxu0 }
 0x1fe   :  { %v308_v57 = vadd.f32 0.5, %v305_v56 }
 0x200   :  { %vm375_vm5 = vcmp.lt.s32.totalorder %v308_v57, 0  ;;  %v376_v58 = vceil.f32 %v308_v57  ;;  %v377_v59 = vfloor.f32 %v308_v57 }
 0x202   :  { %v378_v60 = vsel %vm375_vm5, %v376_v58, %v377_v59 }
 0x203   :  { %v379_v61 = vcvt.f32.s32 %v378_v60 }
 0x205   :  { %310 = vrot.lane.b32.xlu2 %v379_v61, %s411_s0  ;;  %vm315_vm9 = vcmp.ne.s32.totalorder %v379_v61, 0 }
 0x25f   :  { %v311_v62 = vpop.permute.xlu2 %310 }
 0x260   :  { %v313_v63 = vsel %vm312_vm6, 4294967295, %v311_v62 }
 0x261   :  { %vm314_vm8 = vcmp.ne.s32.totalorder %v379_v61, %v313_v63 }
 0x262   :  { %vm316_vm10 = vmand %vm314_vm8, %vm315_vm9 }
 0x263   :  { %vm321_vm11 = vmand %vm316_vm10, %vm320_vm7 }
 0x264   :  { %v322_v0 = vsel %vm321_vm11, 1, %v412_v28 }
 0x265   :  { %v323_v1 = vmul.u32 65536, %v322_v0 }
 0x267   :  { %v324_v2 = vadd.s32 %v379_v61, %v323_v1 }
 0x269   :  { %325 = vst [vmem:[#allocation2] sm:$0x1] %v324_v2 }
 0x26a   :  { %336 = dma.vmem_to_hbm [thread:$0]  %s332_s10, 16, %s334_s13, [#allocation3]  }
 0x26b   :  { %408 = dma.done.wait [#allocation3], 16  }
 0x26c   :  { %409 = vsyncadd [#allocation3], 4294967280 }
 0x26d   :  { %341 = vsyncpa [#allocation3], 1 }

</bundles_post_ra>
